<compile_context>
chip_gen: v7x
topology: tpu7x:2x2x1
jax: 0.10.0
libtpu: 0.0.40
codegen_flags: <defaults>
</compile_context>

<pallas_src>
import jax
import jax.numpy as jnp
from jax import lax
from jax.experimental import pallas as pl
from jax.experimental.pallas import tpu as pltpu


def _make_kernel(block_n, apply_norm, eps, neg_slope):
    if apply_norm:
        def kernel(x_ref, w_ref, o_ref):
            # x_ref: (Nb, K*K*C_in, HW)  lane-dense im2col patches
            # w_ref: (C_out, K*K*C_in)   fused-tap weight
            # o_ref: (Nb, C_out, HW)
            w = w_ref[...]
            for n in range(block_n):  # small static unroll; one fused MXU matmul per sample
                acc = jnp.dot(w, x_ref[n], preferred_element_type=jnp.float32)
                # conv bias intentionally skipped: InstanceNorm's mean-subtraction cancels it.
                mean = jnp.mean(acc, axis=-1, keepdims=True)
                xc = acc - mean
                var = jnp.mean(xc * xc, axis=-1, keepdims=True)  # biased var, like torch IN
                y = xc * lax.rsqrt(var + eps)
                o_ref[n] = jnp.where(y >= 0, y, neg_slope * y).astype(o_ref.dtype)
        return kernel

    def kernel(x_ref, w_ref, b_ref, o_ref):
        w = w_ref[...]
        b = b_ref[...]  # (C_out, 1)
        for n in range(block_n):
            acc = jnp.dot(w, x_ref[n], preferred_element_type=jnp.float32)
            y = acc + b
            o_ref[n] = jnp.where(y >= 0, y, neg_slope * y).astype(o_ref.dtype)
    return kernel


def _choose_block_n(n_total, per_sample_bytes, budget_bytes=8 << 20, max_block=16):
    """Largest divisor of N fitting the VMEM budget; keep grid >= 2 when N >= 2 (v7x megacore)."""
    if n_total <= 1:
        return 1
    best = 1
    for d in range(1, n_total // 2 + 1):
        if d > max_block:
            break
        if n_total % d == 0 and 4 * d * per_sample_bytes <= budget_bytes:
            best = d
    return best


def conv2d_bn_relu(x, weight, bias=None, *, norm_type='IN', stride=1, padding=1,
                   eps=1e-5, negative_slope=0.01, compute_dtype=jnp.float32):
    """Forward pass of Conv2dBnReLU. x: (N, C_in, H, W) float32, NCHW."""
    N, C_in, H, W = x.shape
    C_out, C_in_w, KH, KW = weight.shape
    assert C_in == C_in_w and KH == KW
    K = KH
    Ho = (H + 2 * padding - K) // stride + 1
    Wo = (W + 2 * padding - K) // stride + 1
    HW = Ho * Wo
    KKC = K * K * C_in

    if norm_type is None:
        apply_norm = False
    elif norm_type == 'IN':
        # Matches: `if self.norm_type != 'IN' or h + w > 2: x = self.bn(x)`
        apply_norm = (Ho + Wo) > 2
    elif norm_type == 'BN':
        # TODO(synk): BatchNorm2d needs cross-batch (training-mode) statistics and
        # running-stat state; not implemented in this per-block kernel.
        raise NotImplementedError("norm_type 'BN' not implemented")
    else:
        raise ValueError(f"invalid norm_type {norm_type}")

    # ---- Wrapper-side im2col: lane-dense (N, K*K*C_in, Ho*Wo) patches ----
    xp = jnp.pad(x, ((0, 0), (0, 0), (padding, padding), (padding, padding)))
    taps = []
    for kh in range(K):
        for kw in range(K):
            taps.append(
                lax.slice(
                    xp,
                    (0, 0, kh, kw),
                    (N, C_in, kh + stride * (Ho - 1) + 1, kw + stride * (Wo - 1) + 1),
                    (1, 1, stride, stride),
                ).reshape(N, C_in, HW))
    # contraction index k = (kh*K + kw) * C_in + c_in
    x_col = jnp.concatenate(taps, axis=1).astype(compute_dtype)  # (N, K*K*C_in, HW)

    # Fused-tap weight, flattened to match x_col's contraction ordering.
    w_r = jnp.transpose(weight, (0, 2, 3, 1)).reshape(C_out, KKC).astype(compute_dtype)

    itemsize = jnp.dtype(compute_dtype).itemsize
    per_sample_bytes = KKC * HW * itemsize + C_out * HW * 4
    block_n = _choose_block_n(N, per_sample_bytes)
    grid_n = N // block_n

    in_block_bytes = block_n * KKC * HW * itemsize
    out_block_bytes = block_n * C_out * HW * 4
    w_bytes = C_out * KKC * itemsize + C_out * 4
    vmem_limit = int(min(64 << 20,
                         max(16 << 20, 6 * (in_block_bytes + out_block_bytes) + 2 * w_bytes)))

    kernel = _make_kernel(block_n, apply_norm, eps, negative_slope)

    operands = [x_col, w_r]
    in_specs = [
        pl.BlockSpec((block_n, KKC, HW), lambda n: (n, 0, 0)),
        pl.BlockSpec((C_out, KKC), lambda n: (0, 0)),
    ]
    if not apply_norm:
        b_r = (jnp.zeros((C_out,), jnp.float32) if bias is None else bias)
        b_r = b_r.reshape(C_out, 1).astype(jnp.float32)
        operands.append(b_r)
        in_specs.append(pl.BlockSpec((C_out, 1), lambda n: (0, 0)))

    # TODO(synk): for much larger C_out / H*W, tile HW with a reduction grid axis and a
    # VMEM scratch accumulator instead of holding `acc` as a traced value.
    out_flat = pl.pallas_call(
        kernel,
        out_shape=jax.ShapeDtypeStruct((N, C_out, HW), jnp.float32),
        grid=(grid_n,),
        in_specs=in_specs,
        out_specs=pl.BlockSpec((block_n, C_out, HW), lambda n: (n, 0, 0)),
        compiler_params=pltpu.CompilerParams(
            dimension_semantics=("parallel",),
            vmem_limit_bytes=vmem_limit),
    )(*operands)

    return out_flat.reshape(N, C_out, Ho, Wo)


# ---------------- references (pure JAX) ----------------

def _conv_bias(x, weight, bias):
    y = lax.conv_general_dilated(
        x, weight, window_strides=(1, 1), padding=((1, 1), (1, 1)),
        dimension_numbers=('NCHW', 'OIHW', 'NCHW'))
    return y + bias.reshape(1, -1, 1, 1)


def _reference_in(x, weight, bias, eps=1e-5, negative_slope=0.01):
    y = _conv_bias(x, weight, bias)
    mean = jnp.mean(y, axis=(2, 3), keepdims=True)
    var = jnp.var(y, axis=(2, 3), keepdims=True)  # biased, like torch InstanceNorm
    y = (y - mean) / jnp.sqrt(var + eps)
    return jnp.where(y >= 0, y, negative_slope * y)


def _reference_nonorm(x, weight, bias, negative_slope=0.01):
    y = _conv_bias(x, weight, bias)
    return jnp.where(y >= 0, y, negative_slope * y)


if __name__ == "__main__":
    N, C_IN, C_OUT, H, W = 2, 4, 8, 16, 16

    key = jax.random.PRNGKey(0)
    kx, kw, kb = jax.random.split(key, 3)
    x = jax.random.normal(kx, (N, C_IN, H, W), dtype=jnp.float32)
    weight = 0.1 * jax.random.normal(kw, (C_OUT, C_IN, 3, 3), dtype=jnp.float32)
    bias = 0.1 * jax.random.normal(kb, (C_OUT,), dtype=jnp.float32)

    # IN path, f32 MXU operands -> tight tolerance
    out = jax.block_until_ready(conv2d_bn_relu(x, weight, bias, norm_type='IN'))
    ref = _reference_in(x, weight, bias)
    assert out.shape == (N, C_OUT, H, W)
    assert jnp.allclose(out, ref, rtol=1e-4, atol=1e-4), "IN/f32 mismatch vs reference"

    # no-norm path (exercises the bias branch of the kernel)
    out_nn = jax.block_until_ready(conv2d_bn_relu(x, weight, bias, norm_type=None))
    ref_nn = _reference_nonorm(x, weight, bias)
    assert jnp.allclose(out_nn, ref_nn, rtol=1e-4, atol=1e-4), "no-norm mismatch vs reference"

    # bf16 MXU operands (v6e/v7x throughput path), f32 accumulation -> loose tolerance
    out_bf = jax.block_until_ready(
        conv2d_bn_relu(x, weight, bias, norm_type='IN', compute_dtype=jnp.bfloat16))
    assert jnp.allclose(out_bf, ref, rtol=1e-1, atol=1e-1), "IN/bf16 mismatch vs reference"

    print("KERNEL_OK")
</pallas_src>

<mosaic_0001>
module attributes {stable_mosaic.version = 11 : i64} {
  func.func @kernel(%arg0: i32, %arg1: memref<1x36x256xf32, #tpu.memory_space<vmem>>, %arg2: memref<8x36xf32, #tpu.memory_space<vmem>>, %arg3: memref<1x8x256xf32, #tpu.memory_space<vmem>>) attributes {dimension_semantics = [#tpu.dimension_semantics<parallel>], iteration_bounds = array<i64: 2>, scalar_prefetch = 0 : i64, scratch_operands = 0 : i64, tpu.core_type = #tpu.core_type<tc>, window_params = [{transform_indices = @transform_0, window_bounds = array<i64: 1, 36, 256>}, {pipeline_mode = #tpu.pipeline_mode<synchronous>, transform_indices = @transform_1, window_bounds = array<i64: 8, 36>}, {transform_indices = @transform_2, window_bounds = array<i64: 1, 8, 256>}]} {
    %c0 = arith.constant 0 : index
    %c0_0 = arith.constant 0 : index
    %0 = vector.load %arg2[%c0, %c0_0] : memref<8x36xf32, #tpu.memory_space<vmem>>, vector<8x36xf32>
    %c0_1 = arith.constant 0 : index
    %c0_2 = arith.constant 0 : index
    %c0_3 = arith.constant 0 : index
    %1 = vector.load %arg1[%c0_1, %c0_2, %c0_3] : memref<1x36x256xf32, #tpu.memory_space<vmem>>, vector<1x36x256xf32>
    %2 = vector.shape_cast %1 : vector<1x36x256xf32> to vector<36x256xf32>
    %cst = arith.constant dense<0.000000e+00> : vector<8x256xf32>
    %3 = tpu.matmul %0, %2, %cst {dimension_numbers = #tpu.dot_dimension_numbers<[1], [0], [0], [1], [0, 0, 1, 1], [], []>} : vector<8x36xf32>, vector<36x256xf32>, vector<8x256xf32> -> vector<8x256xf32>
    %cst_4 = arith.constant dense<0.000000e+00> : vector<8xf32>
    %4 = vector.multi_reduction <add>, %3, %cst_4 [1] : vector<8x256xf32> to vector<8xf32>
    %5 = vector.shape_cast %4 : vector<8xf32> to vector<8x1xf32>
    %cst_5 = arith.constant 2.560000e+02 : f32
    %6 = vector.broadcast %cst_5 : f32 to vector<8x1xf32>
    %7 = arith.divf %5, %6 : vector<8x1xf32>
    %8 = vector.broadcast %7 : vector<8x1xf32> to vector<8x256xf32>
    %9 = arith.subf %3, %8 : vector<8x256xf32>
    %10 = arith.mulf %9, %9 : vector<8x256xf32>
    %cst_6 = arith.constant dense<0.000000e+00> : vector<8xf32>
    %11 = vector.multi_reduction <add>, %10, %cst_6 [1] : vector<8x256xf32> to vector<8xf32>
    %12 = vector.shape_cast %11 : vector<8xf32> to vector<8x1xf32>
    %cst_7 = arith.constant 2.560000e+02 : f32
    %13 = vector.broadcast %cst_7 : f32 to vector<8x1xf32>
    %14 = arith.divf %12, %13 : vector<8x1xf32>
    %cst_8 = arith.constant 9.99999974E-6 : f32
    %15 = vector.broadcast %cst_8 : f32 to vector<8x1xf32>
    %16 = arith.addf %14, %15 : vector<8x1xf32>
    %17 = math.rsqrt %16 : vector<8x1xf32>
    %18 = vector.broadcast %17 : vector<8x1xf32> to vector<8x256xf32>
    %19 = arith.mulf %9, %18 : vector<8x256xf32>
    %cst_9 = arith.constant 0.000000e+00 : f32
    %20 = vector.broadcast %cst_9 : f32 to vector<8x256xf32>
    %21 = arith.cmpf oge, %19, %20 : vector<8x256xf32>
    %cst_10 = arith.constant 0.00999999977 : f32
    %22 = vector.broadcast %cst_10 : f32 to vector<8x256xf32>
    %23 = arith.mulf %22, %19 : vector<8x256xf32>
    %24 = arith.select %21, %19, %23 : vector<8x256xi1>, vector<8x256xf32>
    %c0_11 = arith.constant 0 : index
    %c0_12 = arith.constant 0 : index
    %c0_13 = arith.constant 0 : index
    %25 = vector.load %arg3[%c0_11, %c0_12, %c0_13] : memref<1x8x256xf32, #tpu.memory_space<vmem>>, vector<1x8x256xf32>
    %26 = vector.shape_cast %25 : vector<1x8x256xf32> to vector<8x256xf32>
    %27 = vector.shape_cast %24 : vector<8x256xf32> to vector<1x8x256xf32>
    tpu.vector_store %arg3[%c0_11, %c0_12, %c0_13], %27 {strides = array<i32>} : memref<1x8x256xf32, #tpu.memory_space<vmem>>, vector<1x8x256xf32>,
    return
  }
  func.func @transform_0(%arg0: i32) -> (i32, i32, i32) {
    %c0_i32 = arith.constant 0 : i32
    %c0_i32_0 = arith.constant 0 : i32
    %c0_i32_1 = arith.constant 0 : i32
    return %arg0, %c0_i32, %c0_i32_0 : i32, i32, i32
  }
  func.func @transform_1(%arg0: i32) -> (i32, i32) {
    %c0_i32 = arith.constant 0 : i32
    %c0_i32_0 = arith.constant 0 : i32
    %c0_i32_1 = arith.constant 0 : i32
    return %c0_i32, %c0_i32_0 : i32, i32
  }
  func.func @transform_2(%arg0: i32) -> (i32, i32, i32) {
    %c0_i32 = arith.constant 0 : i32
    %c0_i32_0 = arith.constant 0 : i32
    %c0_i32_1 = arith.constant 0 : i32
    return %arg0, %c0_i32, %c0_i32_0 : i32, i32, i32
  }
}

</mosaic_0001>

<bundles_post_ra>
// kernel: tpu_custom_call.1
= control target key start
LH: loop header
LB: loop body
LE: loop exit
PB: predicated region body
PF: predicated region fallthrough
CT: control target
= control target key end

     0   :  { %7 = vsyncpa [#allocation3], 0  ;;  %s584_s0 = inlined_call_operand.vmem [shape: f32[2,36,256], index: 0, kind: input, shape index: {}]   ;;  %s585_s1 = inlined_call_operand.vmem [shape: f32[8,36], index: 1, kind: input, shape index: {}]   ;;  %s586_s2 = inlined_call_operand.hbm [shape: f32[2,8,256], index: 2, kind: output, shape index: {}]  }
   0x1   :  { %9 = vsyncpa [#allocation3 + $0x1], 0  ;;  %s481_s9 = smov 0   ;;  %s483_s10 = smov 0  }
   0x2   :  { %s485_s11 = smov 0   ;;  %s487_s12 = smov 0  }
   0x3 LB: > { %s502_s13 = sadd.s32 4294967295, %s462_s12   ;;  %s334_s14 = sadd.s32 4294967294, %s462_s12   ;;  %s462_s12 = sphi %s487_s12, %s592_s12   ;;  %s458_s11 = sphi %s485_s11, %s591_s11   ;;  %s454_s10 = sphi %s483_s10, %s590_s10   ;;  %s450_s9 = sphi %s481_s9, %s589_s9  }
   0x4   : > { %s506_s15 = sadd.s32 1, %s462_s12   ;;  %s69_s16 = sadd.s32 1, %s458_s11 }
   0x5   : > { %s66_s17 = ssub.s32 %s462_s12, %s506_s15  ;;  %p79_p0 = scmp.ne.s32.totalorder %s458_s11, %s454_s10 }
   0x6   : > { %p67_p1 = scmp.eq.s32.totalorder %s66_s17, 0  ;;  %p80_p2 = scmp.eq.s32.totalorder %s502_s13, 1 }
   0x7   : > { %p85_p3 = scmp.ne.s32.totalorder %s454_s10, %s450_s9  ;;  %p86_p4 = scmp.eq.s32.totalorder %s334_s14, 1 }
   0x8   : > { %s517_s18 = scalar_select %p67_p1, %s458_s11, %s69_s16  }
   0x9   : > { %p519_p5 = por %p80_p2, %p79_p0  ;;  %p523_p6 = por %p86_p4, %p85_p3 }
   0xa   : > { %p337_p7 = scmp.ge.s32.totalorder %s462_s12, 1  ;;  %p115_p8 = scmp.lt.s32.totalorder %s462_s12, 3 }
   0xc   : > { %p116_p9 = pnand %p337_p7, %p115_p8 }
   0xd   : > { %p137_p10 = scmp.lt.s32.totalorder (!%p116_p9), %s502_s13, 1  ;;  %v464_v0 = vmov (!%p116_p9), 0.0   ;;  %vm157_vm0 = vcmask (!%p116_p9), 1043456   ;;  %v142_v15 = vld [vmem:[%s585_s1] sm:$0xff] (!%p116_p9)  ;;  %vm153_vm1 = vcmask (!%p116_p9), 293888   ;;  %s134_s28 = sand.u32 (!%p116_p9), 1, %s454_s10  }
   0xe   : > { %119 = sbr.rel (%p116_p9) target bundleno = 580 (0x244), region = 28  ;;  %228 = vmatprep.mubr.f32.mxu0 (!%p116_p9), %v464_v0  ;;  %s338_s29 = sshll.u32 (!%p116_p9), %s134_s28, 4 }
   0xf   : > { %s348_s30 = sshll.u32 (!%p116_p9), %s502_s13, 8  ;;  %s136_s3 = scalar_lea.vmem (!%p116_p9), [#allocation2], %s338_s29 }
  0x10   : > { %s275_s4 = sshll.u32 (!%p116_p9), %s136_s3, 4  ;;  %s542_s7 = scalar_lea.hbm (!%p116_p9), %s586_s2, %s348_s30  ;;  %s544_s4 = int_to_ptr.vmem [resolvable:$true] %s275_s4 }
  0x11   : > { %s261_s8 = scalar_lea.sflag (!%p116_p9), [#allocation3], %s134_s28  ;;  %s465_s14 = smov (!%p116_p9), [#allocation2]  }
  0x12   : > { %s404_s16 = sshll.u32 (!%p116_p9), %s465_s14, 4  ;;  %s405_s16 = int_to_ptr.vmem [resolvable:$false] %s404_s16 }
  0x13   : > { %s406_s17 = scalar_lea.vmem (!%p116_p9), %s405_s16, 512  ;;  %p407_p0 = scmp.lt.s32.totalorder (!%p116_p9), %s544_s4, %s405_s16 }
  0x15   : > { %s138_s21 = scalar_select %p137_p10, %s502_s13, 1 }
  0x16   : > { %s400_s13 = scalar_lea.vmem %s544_s4, 256 }
  0x17   : > { %s357_s22 = smul.u32 80, %s138_s21  ;;  %p401_p11 = scmp.ne.s32.totalorder %s544_s4, %s400_s13 }
  0x18   : > { %p408_p1 = scmp.lt.s32.totalorder %s406_s17, %s400_s13 }
  0x19   : > { %s141_s25 = scalar_lea.vmem %s584_s0, %s357_s22  ;;  %p402_p12 = pnand %p401_p11, %p519_p5 }
  0x1a   : > { %v144_v1 = vld [vmem:[%s141_s25 + $0x8] sm:$0xff]  ;;  %v146_v2 = vld [vmem:[%s141_s25 + $0x18] sm:$0xff]  ;;  %v143_v3 = vld [vmem:[%s141_s25] sm:$0xff]  ;;  %p409_p2 = por %p408_p1, %p407_p0 }
  0x1b   : > { %v349_v4 = vpack.c.bf16 %v146_v2, %v144_v1  ;;  %v145_v5 = vld [vmem:[%s141_s25 + $0x10] sm:$0xff]  ;;  %v148_v6 = vld [vmem:[%s141_s25 + $0x28] sm:$0xff]  ;;  %v150_v7 = vld [vmem:[%s141_s25 + $0x38] sm:$0xff]  ;;  %p403_p13 = pneg %p402_p12 }
  0x1c   : > { %v351_v8 = vpack.c.bf16 %v145_v5, %v143_v3  ;;  %v353_v9 = vpack.c.bf16 %v150_v7, %v148_v6  ;;  %v147_v10 = vld [vmem:[%s141_s25 + $0x20] sm:$0xff]  ;;  %v149_v11 = vld [vmem:[%s141_s25 + $0x30] sm:$0xff]  ;;  %v152_v13 = vld [vmem:[%s141_s25 + $0x48] sm:$0xf] }
  0x1d   : > { %350 = vmatprep.subr.bf16.mxu0 %v349_v4  ;;  %v355_v12 = vpack.c.bf16 %v149_v11, %v147_v10  ;;  %v151_v14 = vld [vmem:[%s141_s25 + $0x40] sm:$0xf]  ;;  %p410_p3 = pnand %p409_p2, %p403_p13 }
  0x1e   : > { %352 = vmatpush1.bf16.msra.mxu0 %v351_v8 }
  0x1f   : > { %354 = vmatprep.subr.bf16.mxu0 %v353_v9 }
  0x22   : > { %356 = vmatpush1.bf16.msra.mxu0 %v355_v12 }
  0x23   : > { %340 = vmatprep.subr.msk.mxu0 %vm157_vm0, %v152_v13 }
  0x26   : > { %341 = vmatpush1.msk.msra.mxu0 %vm157_vm0, %v151_v14 }
  0x27   : > { %342 = vmatmul.mubr.msk.f32.vlgmr.msra.gmra.mrb[0].mxu0 %vm153_vm1, %v142_v15 }
  0xfa   : > { %v230_v16 = vpop.f32.mrb[0].mxu0 }
  0xfb   : > { %v232_v17 = vpop.f32.mrb[1].mxu0 }
  0xfc   : > { %v235_v18 = vadd.f32 %v232_v17, %v230_v16 }
  0xfe   : > { %236 = vadd.xlane.f32.xlu0 %v235_v18 }
 0x18b   : > { %v237_v19 = vpop.xlane.xlu0 %236 }
 0x18c   : > { %v239_v20 = vmul.f32 0.00390625, %v237_v19 }
 0x18e   : > { %v240_v21 = vsub.f32 %v230_v16, %v239_v20  ;;  %v241_v22 = vsub.f32 %v232_v17, %v239_v20 }
 0x190   : > { %v242_v23 = vmul.f32 %v240_v21, %v240_v21  ;;  %v243_v24 = vmul.f32 %v241_v22, %v241_v22 }
 0x192   : > { %v244_v25 = vadd.f32 %v243_v24, %v242_v23 }
 0x194   : > { %245 = vadd.xlane.f32.xlu0 %v244_v25 }
 0x221   : > { %v246_v26 = vpop.xlane.xlu0 %245 }
 0x222   : > { %v247_v27 = vmul.f32 0.00390625, %v246_v26 }
 0x224   : > { %v248_v28 = vadd.f32 1e-05, %v247_v27 }
 0x226   : > { %398 = vrsqrt.f32 %v248_v28 }
 0x230   : > { %v399_v29 = vpop.eup %398 }
 0x231   : > { %v250_v30 = vmul.f32 %v399_v29, %v240_v21  ;;  %v251_v31 = vmul.f32 %v399_v29, %v241_v22 }
 0x233   : > { %vm252_vm2 = vcmp.ge.f32.partialorder %v250_v30, 0.0  ;;  %vm253_vm3 = vcmp.ge.f32.partialorder %v251_v31, 0.0  ;;  %v254_v32 = vmul.f32 0.01, %v250_v30  ;;  %v255_v33 = vmul.f32 0.01, %v251_v31 }
 0x235   : > { %v256_v34 = vsel %vm252_vm2, %v250_v30, %v254_v32  ;;  %v257_v35 = vsel %vm253_vm3, %v251_v31, %v255_v33 }
 0x236   : > { %258 = vst [vmem:[%s136_s3] sm:$0xff] %v256_v34  ;;  %259 = vst [vmem:[%s136_s3 + $0x8] sm:$0xff] %v257_v35 }
 0x237   : > { %413 = shalt.err (!%p410_p3)
}
 0x238   : > { %s414_s21 = scalar_lea.hbm %s542_s7, 256  ;;  %s418_s24 = scalar_lea.hbm %s586_s2, 512 }
 0x239   : > { %p415_p4 = scmp.ne.s32.totalorder %s542_s7, %s414_s21  ;;  %p419_p9 = scmp.lt.u32.totalorder %s542_s7, %s586_s2 }
 0x23a   : > { %p420_p10 = scmp.lt.u32.totalorder %s418_s24, %s414_s21  ;;  %p422_p12 = scmp.lt.u32.totalorder %s414_s21, %s542_s7 }
 0x23b   : > { %p416_p7 = pnand %p415_p4, %p519_p5 }
 0x23c   : > { %p421_p11 = por %p420_p10, %p419_p9 }
 0x23d   : > { %p417_p8 = pneg %p416_p7 }
 0x23e   : > { %p423_p13 = por %p422_p12, %p421_p11 }
 0x240   : > { %p424_p0 = pnand %p423_p13, %p417_p8 }
 0x242   : > { %427 = shalt.err (!%p424_p0)
}
 0x243   : > { %358 = dma.vmem_to_hbm [thread:$0]  (%p519_p5), %s544_s4, 256, %s542_s7, %s261_s8  }
 0x244 PF: > { %p364_p1 = scmp.ge.s32.totalorder %s462_s12, 2  ;;  %s287_s27 = sand.u32 1, %s450_s9  }
 0x245   : > { %s288_s28 = scalar_lea.sflag [#allocation3], %s287_s27 }
 0x246   : > { %p361_p2 = pnand %p364_p1, %p523_p6 }
 0x248   : > { %445 = dma.done.wait (!%p361_p2), %s288_s28, 256  }
 0x249   : > { %447 = vsyncadd (!%p361_p2), %s288_s28, 4294967040  ;;  %p12_p3 = scmp.ge.s32.totalorder %s506_s15, 4   ;;  %s589_s9 = smov %s454_s10 }
 0x24a   : > { %s590_s10 = smov %s458_s11  ;;  %s591_s11 = smov %s517_s18 }
 0x24b   : > { %s592_s12 = smov %s506_s15  ;;  %14 = sbr.rel (!%p12_p3) target bundleno = 3 (0x3), region = 63 }
 0x252   :  { %293 = vsyncpa [#allocation3], 1 }
 0x253   :  { %295 = vsyncpa [#allocation3 + $0x1], 1 }

</bundles_post_ra>
